<compile_context>
chip_gen: v7x
topology: tpu7x:2x2x1
jax: 0.10.0
libtpu: 0.0.40
codegen_flags: <defaults>
</compile_context>

<pallas_src>
import functools

import jax
import jax.numpy as jnp
from jax.experimental import pallas as pl
from jax.experimental.pallas import tpu as pltpu

_LANE = 128


def _round_up(a, b):
    return (a + b - 1) // b * b


def _kgate_kernel(x_ref, ctx_ref, wt_ref, pt_ref, p2_ref, out_ref,
                  *, n_class, n_proto):
    """One grid step == one tile of TILE_N samples, all classes at once.

    x_ref:   (TILE_N, C)               input features
    ctx_ref: (TILE_N, Dc)              context features
    wt_ref:  (C,  n_proto*n_class)     proto-major flattened weights
    pt_ref:  (Dc, n_proto*n_class)     proto-major flattened prototypes * (-2)
    p2_ref:  (1,  n_proto*n_class)     precomputed ||p||^2 (f32)
    out_ref: (TILE_N, n_class)         sigmoid(w_sel . x) per class
    """
    # Pin MXU operand dtypes to the (wrapper-controlled) weight dtypes so the
    # dot never silently promotes; casts are no-ops when dtypes already match.
    x = x_ref[...].astype(wt_ref.dtype)
    ctx = ctx_ref[...].astype(pt_ref.dtype)

    # One wide matmul per tile for each of (logits, expanded distances).
    logits = jnp.dot(x, wt_ref[...],
                     preferred_element_type=jnp.float32)      # (T, P*NC)
    dist = jnp.dot(ctx, pt_ref[...],
                   preferred_element_type=jnp.float32) + p2_ref[...]  # ||p||^2 - 2 c.p

    nc = n_class
    # Unrolled running argmin over proto-major (T, n_class) lane slices.
    # Strict '<' keeps the earliest prototype on ties (torch.argmin behavior).
    best_d = dist[:, :nc]
    best_z = logits[:, :nc]
    for p in range(1, n_proto):
        d_p = dist[:, p * nc:(p + 1) * nc]
        z_p = logits[:, p * nc:(p + 1) * nc]
        take = d_p < best_d
        best_d = jnp.where(take, d_p, best_d)
        best_z = jnp.where(take, z_p, best_z)

    out_ref[...] = jax.nn.sigmoid(best_z).astype(out_ref.dtype)


def kgate_layer_forward(x, context, prototypes, weights, *,
                        tile_n=None, context_compute_dtype=None):
    """Pallas forward for KGateLayer (GLN_type='proto').

    x:          (N, in_channels)
    context:    (N, context_dim)
    prototypes: (n_class, n_proto, context_dim)
    weights:    (n_class, n_proto, in_channels)
    context_compute_dtype: optional dtype (e.g. jnp.bfloat16) for the
        context-distance matmul (v6e/v7x MXU-native feed); default keeps the
        input dtype so results match the f32 reference exactly.

    Returns a lane-dense (N, n_class) array; column c is the output of the
    module's c-th class neuron (its (N, 1) tensor, squeezed).
    """
    N, C = x.shape
    Dc = context.shape[1]
    n_class, n_proto, _ = prototypes.shape
    p_total = n_class * n_proto

    w_dt = x.dtype
    c_dt = (context.dtype if context_compute_dtype is None
            else jnp.dtype(context_compute_dtype))

    # ---- one-time layout prep (proto-major flatten: column = p*n_class + c) --
    # wt[k, p*nc + c] = weights[c, p, k]
    wt = jnp.transpose(weights, (2, 1, 0)).reshape(C, p_total).astype(w_dt)
    # pt[k, p*nc + c] = -2 * prototypes[c, p, k]   (folds the -2 into the MXU)
    pt = (-2.0 * jnp.transpose(prototypes, (2, 1, 0)).astype(jnp.float32)
          ).reshape(Dc, p_total).astype(c_dt)
    # p2[0, p*nc + c] = ||prototypes[c, p]||^2
    p2 = jnp.sum(jnp.transpose(prototypes, (1, 0, 2)).astype(jnp.float32) ** 2,
                 axis=-1).reshape(1, p_total)

    # ---- generation-aware tile / VMEM policy --------------------------------
    x_it = x.dtype.itemsize
    c_it = context.dtype.itemsize
    # dtype-aware sublane multiple: 8 (f32) / 16 (bf16) / 32 (int8)
    sub = max(8, (8 * 4) // min(x_it, c_it))

    try:
        vmem_cap = int(pltpu.get_tpu_info().vmem_capacity_bytes)
    except Exception:
        vmem_cap = 64 * 2 ** 20                      # v7x-safe fallback
    budget = int(vmem_cap * 0.55)                    # headroom for Mosaic scratch

    def _lane(c):
        return _round_up(max(int(c), 1), _LANE)

    def est_bytes(t):
        # VMEM (8,128)-tiled layouts lane-pad narrow arrays, so estimate with
        # lane-rounded widths.
        stream = 2 * t * (_lane(C) * x_it + _lane(Dc) * c_it)     # x, ctx (dbl-buf)
        outb = 2 * t * _lane(n_class) * 4                         # out (dbl-buf)
        resid = 2 * (_round_up(C, 8) * _lane(p_total) * wt.dtype.itemsize
                     + _round_up(Dc, 8) * _lane(p_total) * pt.dtype.itemsize
                     + 8 * _lane(p_total) * 4)                    # wt, pt, p2
        interm = (t * _lane(p_total) * 4 * 2                      # logits, dist
                  + t * _lane(n_class) * 4 * 6)                   # running-min temps
        return stream + outb + resid + interm

    if tile_n is None:
        row_b = _lane(C) * x_it + _lane(Dc) * c_it
        tile = max(512, (2 * 2 ** 20) // row_b)      # ~2 MiB per streamed buffer
        # keep >= ~8 grid steps when N allows (megacore on v7x, pipeline depth)
        tile = min(tile, max(512, pl.cdiv(N, 8)))
    else:
        tile = int(tile_n)
    tile = _round_up(max(tile, sub), sub)
    tile = min(tile, _round_up(N, sub))
    while est_bytes(tile) > budget and tile > sub:
        tile = max(sub, _round_up(tile // 2, sub))

    grid = (pl.cdiv(N, tile),)                       # ragged last block is masked

    kernel = functools.partial(_kgate_kernel, n_class=n_class, n_proto=n_proto)

    out = pl.pallas_call(
        kernel,
        out_shape=jax.ShapeDtypeStruct((N, n_class), jnp.float32),
        grid=grid,
        in_specs=[
            pl.BlockSpec((tile, C), lambda i: (i, 0)),       # x tile (streamed)
            pl.BlockSpec((tile, Dc), lambda i: (i, 0)),      # context tile (streamed)
            pl.BlockSpec((C, p_total), lambda i: (0, 0)),    # weights (grid-invariant)
            pl.BlockSpec((Dc, p_total), lambda i: (0, 0)),   # prototypes*-2 (invariant)
            pl.BlockSpec((1, p_total), lambda i: (0, 0)),    # ||p||^2 (invariant)
        ],
        out_specs=pl.BlockSpec((tile, n_class), lambda i: (i, 0)),
        compiler_params=pltpu.CompilerParams(
            dimension_semantics=("parallel",),
            vmem_limit_bytes=int(min(0.9 * vmem_cap, 128 * 2 ** 20)),
        ),
    )(x, context, wt, pt, p2)

    return out                                       # (N, n_class)


def kgate_layer_forward_list(x, context, prototypes, weights, **kw):
    """Mirror of the PyTorch forward's list-of-(N, 1) return signature."""
    slab = kgate_layer_forward(x, context, prototypes, weights, **kw)
    return [slab[:, c:c + 1] for c in range(slab.shape[1])]


def _reference_forward(x, context, prototypes, weights):
    """Pure-JAX reference (direct (c - p)^2 distances), stacked (N, n_class)."""
    cols = []
    for c in range(prototypes.shape[0]):
        proto = prototypes[c]                                    # (P, Dc)
        w = weights[c]                                           # (P, C)
        d = jnp.sum((context[:, None, :] - proto[None, :, :]) ** 2, axis=-1)
        idx = jnp.argmin(d, axis=-1)                             # (N,)
        w_sel = w[idx]                                           # (N, C)
        z = jnp.sum(x * w_sel, axis=-1)                          # (N,)
        cols.append(jax.nn.sigmoid(z))
    return jnp.stack(cols, axis=-1)                              # (N, n_class)


if __name__ == "__main__":
    # Small deterministic example consistent with the module's __init__:
    #   in_channels=8, n_class=2, n_proto=2, context_dim=0 -> in_channels.
    # N=50 with tile_n=16 exercises the cdiv grid + ragged-last-block path
    # (grid=(4,), last block only 2 valid rows); the second call exercises the
    # generation-aware auto-tile path.
    N = 50
    in_channels = 8
    n_class = 2
    n_proto = 2
    context_dim = in_channels

    key = jax.random.PRNGKey(0)
    kx, kc, kp, kw = jax.random.split(key, 4)

    x = jax.random.normal(kx, (N, in_channels), dtype=jnp.float32)
    context = jax.random.normal(kc, (N, context_dim), dtype=jnp.float32)
    prototypes = jax.random.normal(kp, (n_class, n_proto, context_dim),
                                   dtype=jnp.float32)
    weights = jax.random.normal(kw, (n_class, n_proto, in_channels),
                                dtype=jnp.float32) * 0.1

    ref = _reference_forward(x, context, prototypes, weights)

    out = kgate_layer_forward(x, context, prototypes, weights, tile_n=16)
    out = jax.block_until_ready(out)
    assert out.shape == (N, n_class)
    assert jnp.allclose(out, ref, atol=1e-5), "mismatch vs reference (tiled path)"

    out_auto = kgate_layer_forward(x, context, prototypes, weights)
    out_auto = jax.block_until_ready(out_auto)
    assert jnp.allclose(out_auto, ref, atol=1e-5), "mismatch vs reference (auto path)"

    print("KERNEL_OK")
</pallas_src>

<mosaic_0001>
module attributes {stable_mosaic.version = 11 : i64} {
  func.func @_kgate_kernel(%arg0: i32, %arg1: memref<16x8xf32, #tpu.memory_space<vmem>>, %arg2: memref<16x8xf32, #tpu.memory_space<vmem>>, %arg3: memref<8x4xf32, #tpu.memory_space<vmem>>, %arg4: memref<8x4xf32, #tpu.memory_space<vmem>>, %arg5: memref<1x4xf32, #tpu.memory_space<vmem>>, %arg6: memref<16x2xf32, #tpu.memory_space<vmem>>) attributes {dimension_semantics = [#tpu.dimension_semantics<parallel>], iteration_bounds = array<i64: 4>, scalar_prefetch = 0 : i64, scratch_operands = 0 : i64, tpu.core_type = #tpu.core_type<tc>, window_params = [{transform_indices = @transform_0, window_bounds = array<i64: 16, 8>}, {transform_indices = @transform_1, window_bounds = array<i64: 16, 8>}, {pipeline_mode = #tpu.pipeline_mode<synchronous>, transform_indices = @transform_2, window_bounds = array<i64: 8, 4>}, {pipeline_mode = #tpu.pipeline_mode<synchronous>, transform_indices = @transform_3, window_bounds = array<i64: 8, 4>}, {pipeline_mode = #tpu.pipeline_mode<synchronous>, transform_indices = @transform_4, window_bounds = array<i64: 1, 4>}, {transform_indices = @transform_5, window_bounds = array<i64: 16, 2>}]} {
    %c0 = arith.constant 0 : index
    %c0_0 = arith.constant 0 : index
    %0 = vector.load %arg1[%c0, %c0_0] : memref<16x8xf32, #tpu.memory_space<vmem>>, vector<16x8xf32>
    %c0_1 = arith.constant 0 : index
    %c0_2 = arith.constant 0 : index
    %1 = vector.load %arg2[%c0_1, %c0_2] : memref<16x8xf32, #tpu.memory_space<vmem>>, vector<16x8xf32>
    %c0_3 = arith.constant 0 : index
    %c0_4 = arith.constant 0 : index
    %2 = vector.load %arg3[%c0_3, %c0_4] : memref<8x4xf32, #tpu.memory_space<vmem>>, vector<8x4xf32>
    %cst = arith.constant dense<0.000000e+00> : vector<16x4xf32>
    %3 = tpu.matmul %0, %2, %cst {dimension_numbers = #tpu.dot_dimension_numbers<[1], [0], [0], [1], [0, 0, 1, 1], [], []>} : vector<16x8xf32>, vector<8x4xf32>, vector<16x4xf32> -> vector<16x4xf32>
    %c0_5 = arith.constant 0 : index
    %c0_6 = arith.constant 0 : index
    %4 = vector.load %arg4[%c0_5, %c0_6] : memref<8x4xf32, #tpu.memory_space<vmem>>, vector<8x4xf32>
    %cst_7 = arith.constant dense<0.000000e+00> : vector<16x4xf32>
    %5 = tpu.matmul %1, %4, %cst_7 {dimension_numbers = #tpu.dot_dimension_numbers<[1], [0], [0], [1], [0, 0, 1, 1], [], []>} : vector<16x8xf32>, vector<8x4xf32>, vector<16x4xf32> -> vector<16x4xf32>
    %c0_8 = arith.constant 0 : index
    %c0_9 = arith.constant 0 : index
    %6 = vector.load %arg5[%c0_8, %c0_9] : memref<1x4xf32, #tpu.memory_space<vmem>>, vector<1x4xf32>
    %7 = vector.broadcast %6 : vector<1x4xf32> to vector<16x4xf32>
    %8 = arith.addf %5, %7 : vector<16x4xf32>
    %9 = vector.extract_strided_slice %8 {offsets = [0, 0], sizes = [16, 2], strides = [1, 1]} : vector<16x4xf32> to vector<16x2xf32>
    %10 = vector.extract_strided_slice %3 {offsets = [0, 0], sizes = [16, 2], strides = [1, 1]} : vector<16x4xf32> to vector<16x2xf32>
    %11 = vector.extract_strided_slice %8 {offsets = [0, 2], sizes = [16, 2], strides = [1, 1]} : vector<16x4xf32> to vector<16x2xf32>
    %12 = vector.extract_strided_slice %3 {offsets = [0, 2], sizes = [16, 2], strides = [1, 1]} : vector<16x4xf32> to vector<16x2xf32>
    %13 = arith.cmpf olt, %11, %9 : vector<16x2xf32>
    %14 = arith.select %13, %12, %10 : vector<16x2xi1>, vector<16x2xf32>
    %15 = arith.negf %14 : vector<16x2xf32>
    %16 = math.exp %15 : vector<16x2xf32>
    %cst_10 = arith.constant 1.000000e+00 : f32
    %17 = vector.broadcast %cst_10 : f32 to vector<16x2xf32>
    %18 = arith.addf %17, %16 : vector<16x2xf32>
    %19 = arith.divf %17, %18 : vector<16x2xf32>
    %c0_11 = arith.constant 0 : index
    %c0_12 = arith.constant 0 : index
    %20 = vector.load %arg6[%c0_11, %c0_12] : memref<16x2xf32, #tpu.memory_space<vmem>>, vector<16x2xf32>
    tpu.vector_store %arg6[%c0_11, %c0_12], %19 {strides = array<i32>} : memref<16x2xf32, #tpu.memory_space<vmem>>, vector<16x2xf32>,
    return
  }
  func.func @transform_0(%arg0: i32) -> (i32, i32) {
    %c0_i32 = arith.constant 0 : i32
    %c0_i32_0 = arith.constant 0 : i32
    return %arg0, %c0_i32 : i32, i32
  }
  func.func @transform_1(%arg0: i32) -> (i32, i32) {
    %c0_i32 = arith.constant 0 : i32
    %c0_i32_0 = arith.constant 0 : i32
    return %arg0, %c0_i32 : i32, i32
  }
  func.func @transform_2(%arg0: i32) -> (i32, i32) {
    %c0_i32 = arith.constant 0 : i32
    %c0_i32_0 = arith.constant 0 : i32
    %c0_i32_1 = arith.constant 0 : i32
    return %c0_i32, %c0_i32_0 : i32, i32
  }
  func.func @transform_3(%arg0: i32) -> (i32, i32) {
    %c0_i32 = arith.constant 0 : i32
    %c0_i32_0 = arith.constant 0 : i32
    %c0_i32_1 = arith.constant 0 : i32
    return %c0_i32, %c0_i32_0 : i32, i32
  }
  func.func @transform_4(%arg0: i32) -> (i32, i32) {
    %c0_i32 = arith.constant 0 : i32
    %c0_i32_0 = arith.constant 0 : i32
    %c0_i32_1 = arith.constant 0 : i32
    return %c0_i32, %c0_i32_0 : i32, i32
  }
  func.func @transform_5(%arg0: i32) -> (i32, i32) {
    %c0_i32 = arith.constant 0 : i32
    %c0_i32_0 = arith.constant 0 : i32
    return %arg0, %c0_i32 : i32, i32
  }
}

</mosaic_0001>

<bundles_post_ra>
// kernel: tpu_custom_call.1
= control target key start
LH: loop header
LB: loop body
LE: loop exit
PB: predicated region body
PF: predicated region fallthrough
CT: control target
= control target key end

     0   :  { %s1008_s18 = smov 0   ;;  %s1010_s19 = smov 0   ;;  %s1103_s0 = inlined_call_operand.vmem [shape: f32[50,8], index: 0, kind: input, shape index: {}]   ;;  %s1104_s1 = inlined_call_operand.vmem [shape: f32[50,8], index: 1, kind: input, shape index: {}]   ;;  %s1105_s2 = inlined_call_operand.vmem [shape: f32[8,4], index: 2, kind: input, shape index: {}]   ;;  %s1106_s3 = inlined_call_operand.vmem [shape: f32[8,4], index: 3, kind: input, shape index: {}]   ;;  %s1107_s4 = inlined_call_operand.vmem [shape: f32[1,4], index: 4, kind: input, shape index: {}]   ;;  %s1108_s5 = inlined_call_operand.vmem [shape: f32[50,2], index: 5, kind: output, shape index: {}]  }
   0x1   :  { %s1012_s20 = smov 0  }
   0x2 LB: > { %s1021_s21 = sadd.s32 4294967295, %s942_s20   ;;  %s1023_s22 = sadd.s32 1, %s942_s20   ;;  %s942_s20 = sphi %s1012_s20, %s1112_s20   ;;  %s938_s19 = sphi %s1010_s19, %s1111_s19   ;;  %s934_s18 = sphi %s1008_s18, %s1110_s18  }
   0x3   : > { %s134_s23 = ssub.s32 %s942_s20, %s1023_s22  ;;  %s137_s24 = sadd.s32 1, %s938_s19 }
   0x4   : > { %p135_p0 = scmp.eq.s32.totalorder %s134_s23, 0  ;;  %p147_p1 = scmp.ne.s32.totalorder %s938_s19, %s934_s18 }
   0x5   : > { %p148_p2 = scmp.eq.s32.totalorder %s1021_s21, 3  ;;  %p741_p3 = scmp.ge.s32.totalorder %s942_s20, 1 }
   0x6   : > { %s1031_s25 = scalar_select %p135_p0, %s938_s19, %s137_s24  }
   0x7   : > { %p1033_p4 = por %p148_p2, %p147_p1  ;;  %p215_p5 = scmp.lt.s32.totalorder %s942_s20, 5 }
   0x9   : > { %p216_p6 = pnand %p741_p3, %p215_p5 }
   0xa   : > { %v292_v0 = vld [vmem:[%s1105_s2] sm:$0xff] (!%p216_p6)  ;;  %s1044_s6 = sshll.u32 (!%p216_p6), %s1021_s21, 1  ;;  %vm293_vm0 = vcmask (!%p216_p6), 64512   ;;  %s976_s17 = smov (!%p216_p6), 2   ;;  %vm504_vm3 = vcmask (!%p216_p6), 15360  }
   0xb   : > { %219 = sbr.rel (%p216_p6) target bundleno = 552 (0x228), region = 40  ;;  %v375_v1 = vld [vmem:[%s1106_s3] sm:$0xff] (!%p216_p6)  ;;  %780 = vmatprep.subr.mxu0 (!%p216_p6), %v292_v0  ;;  %p260_p7 = scmp.lt.s32.totalorder (!%p216_p6), %s1044_s6, 6 }
   0xc   : > { %785 = vmatprep.subr.mxu1 (!%p216_p6), %v375_v1  ;;  %781 = vmatpush3.msra.mxu0 (!%p216_p6), %v292_v0  ;;  %v749_v6 = vld [vmem:[%s1107_s4] ss:$0 sm:$0xff] (!%p216_p6)  ;;  %s977_s20 = smov (!%p216_p6), 126   ;;  %s252_s23 = sand.u32 (!%p216_p6), 1, %s934_s18  }
   0xd   : > { %786 = vmatpush3.msra.mxu1 (!%p216_p6), %v375_v1  ;;  %s742_s24 = sshll.u32 (!%p216_p6), %s252_s23, 4 }
   0xe   : > { %s1058_s27 = scalar_lea.vmem (!%p216_p6), [#allocation2], %s742_s24  }
  0x12   : > { %s261_s7 = scalar_select %p260_p7, %s1044_s6, 6 }
  0x13   : > { %s515_s28 = ssub.s32 (%p1033_p4), 7, %s1044_s6  ;;  %s771_s29 = sshll.u32 (%p1033_p4), %s1021_s21, 4 }
  0x14   : > { %s744_s8 = sshll.u32 %s261_s7, 3  ;;  %p516_p8 = scmp.lt.s32.totalorder (%p1033_p4), %s515_s28, 2 }
  0x15   : > { %s263_s11 = scalar_lea.vmem %s1103_s0, %s744_s8  ;;  %s277_s14 = scalar_lea.vmem %s1104_s1, %s744_s8 }
  0x16   : > { %v288_v2 = vld [vmem:[%s263_s11] sm:$0xff]  ;;  %v289_v3 = vld [vmem:[%s263_s11 + $0x8] sm:$0xff]  ;;  %s1069_s7 = scalar_lea.vmem (%p1033_p4), %s1108_s5, %s771_s29  }
  0x17   : > { %v290_v4 = vld [vmem:[%s277_s14] sm:$0xff]  ;;  %782 = vmatprep.mubr.msk.f32.mxu0 %vm293_vm0, %v288_v2  ;;  %v291_v5 = vld [vmem:[%s277_s14 + $0x8] sm:$0xff] }
  0x18   : > { %787 = vmatprep.mubr.msk.f32.mxu1 %vm293_vm0, %v290_v4  ;;  %783 = vmatmul.mubr.msk.f32.vlgmr.msra.gmra.mrb[0].mxu0 %vm293_vm0, %v289_v3 }
  0x19   : > { %788 = vmatmul.mubr.msk.f32.vlgmr.msra.gmra.mrb[0].mxu1 %vm293_vm0, %v291_v5 }
  0xeb   : > { %v784_v7 = vpop.f32.mrb[0].mxu0 }
  0xec   : > { %v789_v8 = vpop.f32.mrb[0].mxu1  ;;  %v366_v9 = vpop.f32.mrb[1].mxu0 }
  0xed   : > { %v455_v10 = vpop.f32.mrb[1].mxu1  ;;  %476 = vrot.lane.b32.xlu1 %v366_v9, %s976_s17  ;;  %v461_v12 = vadd.f32 %v789_v8, %v749_v6 }
  0xee   : > { %v456_v11 = vadd.f32 %v749_v6, %v455_v10 }
  0xf0   : > { %466 = vrot.lane.b32.xlu0 %v456_v11, %s976_s17 }
  0xf1   : > { %478 = vrot.lane.b32.xlu1 %v784_v7, %s976_s17 }
  0xf4   : > { %468 = vrot.lane.b32.xlu0 %v461_v12, %s976_s17 }
 0x15f   : > { %v477_v13 = vpop.permute.xlu1 %476 }
 0x162   : > { %v467_v14 = vpop.permute.xlu0 %466 }
 0x163   : > { %vm472_vm1 = vcmp.lt.f32.partialorder %v456_v11, %v467_v14  ;;  %v479_v18 = vpop.permute.xlu1 %478 }
 0x164   : > { %v482_v15 = vsel %vm472_vm1, %v366_v9, %v477_v13 }
 0x165   : > { %v752_v16 = vmul.f32 -1.442695, %v482_v15 }
 0x166   : > { %v469_v17 = vpop.permute.xlu0 %468 }
 0x167   : > { %880 = vpow2.f32 %v752_v16  ;;  %vm473_vm2 = vcmp.lt.f32.partialorder %v461_v12, %v469_v17 }
 0x168   : > { %v483_v19 = vsel %vm473_vm2, %v784_v7, %v479_v18 }
 0x169   : > { %v753_v20 = vmul.f32 -1.442695, %v483_v19 }
 0x16b   : > { %882 = vpow2.f32 %v753_v20 }
 0x171   : > { %v881_v21 = vpop.eup %880 }
 0x172   : > { %v490_v22 = vadd.f32 1.0, %v881_v21 }
 0x174   : > { %884 = vrcp.f32 %v490_v22 }
 0x175   : > { %v883_v23 = vpop.eup %882 }
 0x176   : > { %v491_v24 = vadd.f32 1.0, %v883_v23 }
 0x178   : > { %886 = vrcp.f32 %v491_v24 }
 0x17e   : > { %v885_v25 = vpop.eup %884 }
 0x17f   : > { %498 = vrot.lane.b32.xlu0 %v885_v25, %s977_s20 }
 0x182   : > { %v887_v26 = vpop.eup %886 }
 0x183   : > { %500 = vrot.lane.b32.xlu1 %v887_v26, %s977_s20 }
 0x1f0   : > { %513 = sbr.rel (!%p1033_p4) target bundleno = 552 (0x228), region = 44 }
 0x1f1   : > { %v499_v27 = vpop.permute.xlu0 %498 }
 0x1f2   : > { %505 = vst.msk [vmem:[%s1058_s27] sm:$0xff] %vm504_vm3, %v499_v27 }
 0x1f5   : > { %v501_v28 = vpop.permute.xlu1 %500 }
 0x1f6   : > { %506 = vst.msk [vmem:[%s1058_s27 + $0x8] sm:$0xff] %vm504_vm3, %v501_v28 }
 0x1f7   : > { %s1114_s28 = smov (!%p516_p8, %s515_s28), 2 }
 0x1f8   : > { %s756_s8 = sshll.u32 %s1114_s28, 7 }
 0x1f9   : > { %p759_p9 = scmp.eq.s32.totalorder %s756_s8, 0 }
 0x1fa   : > { %s1075_s9 = sshrl.u32 (!%p759_p9), %s1114_s28, 1 }
 0x1fb   : > { %524 = sbr.rel (%p759_p9) target bundleno = 552 (0x228), region = 48  ;;  %p760_p10 = scmp.le.s32.totalorder (!%p759_p9), %s1075_s9, 0 }
 0x202   : > { %688 = sbr.rel (%p760_p10) target bundleno = 531 (0x213), region = 127  ;;  %s944_s21 = smov (!%p760_p10), %s1069_s7  }
 0x203   : > { %s948_s26 = smov (!%p760_p10), %s1058_s27   ;;  %s952_s6 = smov (!%p760_p10), 0  }
 0x204   : > { %s956_s10 = smov (!%p760_p10), 0  }
 0x209 LB: >> { %v588_v29 = vld [vmem:[%s950_s26] sm:$0xff]  ;;  %v590_v30 = vld [vmem:[%s950_s26 + $0x8] sm:$0xff]  ;;  %s592_s11 = sadd.s32 1, %s954_s6  ;;  %s582_s10 = sadd.s32 1, %s958_s10   ;;  %s958_s10 = sphi %s956_s10, %s582_s10   ;;  %s954_s6 = sphi %s952_s6, %s953_s6   ;;  %s950_s26 = sphi %s948_s26, %s597_s26   ;;  %s946_s21 = sphi %s944_s21, %s598_s21  }
 0x20a   : >> { %589 = vst [vmem:[%s946_s21] sm:$0xff] %v588_v29  ;;  %591 = vst [vmem:[%s946_s21 + $0x8] sm:$0xff] %v590_v30  ;;  %p593_p11 = scmp.ge.s32.totalorder %s592_s11, %s1075_s9  ;;  %p581_p12 = scmp.ge.s32.totalorder %s582_s10, %s1075_s9 }
 0x20c   : >> { %s1116_s11 = smov (%p593_p11, %s592_s11), 0  ;;  %584 = sbr.rel (!%p581_p12) target bundleno = 521 (0x209), region = 133 }
 0x20d   : >> { %s761_s12 = sshll.u32 %s1116_s11, 4  ;;  %s953_s6 = smov %s1116_s11  }
 0x20e   : >> { %s597_s26 = scalar_lea.vmem %s1058_s27, %s761_s12 [#allocation2]   ;;  %s598_s21 = scalar_lea.vmem %s1069_s7, %s761_s12  }
 0x213 PF: > { %s1085_s13 = sand.u32 1, %s1114_s28   ;;  %s772_s14 = sshll.u32 %s1075_s9, 4 }
 0x214   : > { %s603_s15 = scalar_lea.vmem %s1058_s27, %s772_s14 [#allocation2]   ;;  %s605_s16 = scalar_lea.vmem %s1069_s7, %s772_s14  }
 0x215   : > { %p766_p13 = scmp.le.s32.totalorder %s1085_s13, 0 }
 0x216   : > { %s960_s17 = smov (!%p766_p13), %s605_s16   ;;  %s964_s20 = smov (!%p766_p13), %s603_s15  }
 0x217   : > { %702 = sbr.rel (%p766_p13) target bundleno = 552 (0x228), region = 138  ;;  %s968_s23 = smov (!%p766_p13), 0  }
 0x218   : > { %s972_s24 = smov (!%p766_p13), 0  }
 0x21e LB: >> { %v615_v31 = vld [vmem:[%s966_s20] sm:$0xff]  ;;  %s617_s28 = sadd.s32 1, %s970_s23  ;;  %s609_s24 = sadd.s32 1, %s974_s24   ;;  %s974_s24 = sphi %s972_s24, %s609_s24   ;;  %s970_s23 = sphi %s968_s23, %s969_s23   ;;  %s966_s20 = sphi %s964_s20, %s622_s20   ;;  %s962_s17 = sphi %s960_s17, %s623_s17  }
 0x21f   : >> { %616 = vst [vmem:[%s962_s17] sm:$0xff] %v615_v31  ;;  %p618_p0 = scmp.ge.s32.totalorder %s617_s28, %s1085_s13  ;;  %p608_p1 = scmp.ge.s32.totalorder %s609_s24, %s1085_s13 }
 0x221   : >> { %s1118_s28 = smov (%p618_p0, %s617_s28), 0  ;;  %611 = sbr.rel (!%p608_p1) target bundleno = 542 (0x21e), region = 144 }
 0x222   : >> { %s767_s27 = sshll.u32 %s1118_s28, 3  ;;  %s969_s23 = smov %s1118_s28  }
 0x223   : >> { %s622_s20 = scalar_lea.vmem %s603_s15, %s767_s27 [#allocation2]   ;;  %s623_s17 = scalar_lea.vmem %s605_s16, %s767_s27  }
 0x228 PF: > { %p12_p2 = scmp.ge.s32.totalorder %s1023_s22, 6   ;;  %s1110_s18 = smov %s938_s19 }
 0x229   : > { %s1111_s19 = smov %s1031_s25  ;;  %s1112_s20 = smov %s1023_s22 }
 0x22a   :  { %14 = sbr.rel (!%p12_p2) target bundleno = 2 (0x2), region = 155 }

</bundles_post_ra>
